<compile_context>
chip_gen: v6e
topology: v6e:2x2x1
jax: 0.10.0
libtpu: 0.0.40
codegen_flags: <defaults>
</compile_context>

<pallas_src>
import math
from functools import partial

import jax
import jax.numpy as jnp
from jax.experimental import pallas as pl
from jax.experimental.pallas import tpu as pltpu


def _round_up(x: int, m: int) -> int:
    return ((x + m - 1) // m) * m


def _vmem_capacity_bytes() -> int:
    try:
        return int(pltpu.get_tpu_info().vmem_capacity_bytes)
    except Exception:
        return 64 * 1024 * 1024  # conservative default (v7x per-TensorCore)


def _pick_batch_tile(B, D_in, D_out, in_itemsize, out_itemsize, vmem_cap) -> int:
    """Largest lane-friendly batch tile whose working set fits comfortably in VMEM."""
    weight_bytes = (D_in * 2 * D_out + 2 * D_out) * in_itemsize      # resident, single-buffered
    per_row = ((2 * D_in + 2 * D_out) * in_itemsize                  # x + eps, double-buffered
               + (2 * 3 * D_out) * out_itemsize                      # mu/scale/samples, double-buffered
               + 2 * D_out * 4)                                      # f32 matmul result tile
    budget = int(vmem_cap * 0.45) - weight_bytes
    if budget <= per_row * 128:
        # TODO(synk): for layers whose weights do not fit VMEM even single-buffered,
        # add a D_in-reduction grid axis with a VMEM accumulator instead.
        tb = 128
    else:
        tb = min(1024, (budget // per_row) // 128 * 128)
    tb = min(tb, _round_up(B, 8))
    return max(8, (tb // 8) * 8)


def _normal_layer_kernel(x_ref, w_ref, b_ref, eps_ref, *out_refs, d_out, fused_out):
    """Fused: single MXU pass ([W_mu|W_logvar]) + bias + exp(0.5*logvar) + rsample."""
    x = x_ref[...]
    y = jnp.dot(x, w_ref[...], preferred_element_type=jnp.float32)   # (tb, 2*d_out), f32 accumulate
    y = y + b_ref[...].astype(jnp.float32)
    mu = y[:, :d_out]
    scale = jnp.exp(0.5 * y[:, d_out:])                               # EUP transcendental
    samples = mu + scale * eps_ref[...].astype(jnp.float32)
    if fused_out:
        # Lane-dense single slab store (used when d_out is not a multiple of 128).
        slab_ref, = out_refs
        slab_ref[...] = jnp.concatenate([mu, scale, samples], axis=-1).astype(slab_ref.dtype)
    else:
        mu_ref, scale_ref, samp_ref = out_refs
        mu_ref[...] = mu.astype(mu_ref.dtype)
        scale_ref[...] = scale.astype(scale_ref.dtype)
        samp_ref[...] = samples.astype(samp_ref.dtype)


def normal_layer_forward(x, w_cat, b_cat, eps, *, block_b=None, out_dtype=None):
    """Pallas forward.

    x:     (B, D_in)
    w_cat: (D_in, 2*D_out)  = concat([W_mu, W_logvar], axis=1)   (pre-transposed)
    b_cat: (2*D_out,)       = concat([b_mu, b_logvar])
    eps:   (B, D_out)       standard-normal noise (reparameterization trick)
    """
    B, D_in = x.shape
    assert w_cat.shape[0] == D_in and w_cat.shape[1] % 2 == 0
    D_out = w_cat.shape[1] // 2
    assert eps.shape == (B, D_out)
    assert b_cat.shape == (2 * D_out,)

    out_dtype = jnp.dtype(out_dtype) if out_dtype is not None else jnp.dtype(x.dtype)
    in_itemsize = jnp.dtype(x.dtype).itemsize
    out_itemsize = out_dtype.itemsize

    vmem_cap = _vmem_capacity_bytes()
    if block_b is None:
        tb = _pick_batch_tile(B, D_in, D_out, in_itemsize, out_itemsize, vmem_cap)
    else:
        # Clamp user-supplied tile to a multiple of 8 (sublane rule) and to the batch.
        tb = max(8, (min(block_b, _round_up(B, 8)) // 8) * 8)

    grid = (pl.cdiv(B, tb),)                    # ragged last block is masked by Pallas
    fused_out = (D_out % 128) != 0              # lane-dense output slab for small gaussian_dim

    b_cat2 = b_cat.reshape(1, 2 * D_out)        # 2-D so it lives as a normal VMEM tile

    # Grid-invariant weight/bias: single-buffered residents.
    resident = {"pipeline_mode": pl.Buffered(1)} if hasattr(pl, "Buffered") else {}
    in_specs = [
        pl.BlockSpec((tb, D_in), lambda i: (i, 0)),                    # encoding tile
        pl.BlockSpec((D_in, 2 * D_out), lambda i: (0, 0), **resident), # [W_mu | W_logvar]
        pl.BlockSpec((1, 2 * D_out), lambda i: (0, 0), **resident),    # [b_mu | b_logvar]
        pl.BlockSpec((tb, D_out), lambda i: (i, 0)),                   # eps tile
    ]
    if fused_out:
        out_shape = jax.ShapeDtypeStruct((B, 3 * D_out), out_dtype)
        out_specs = pl.BlockSpec((tb, 3 * D_out), lambda i: (i, 0))
    else:
        out_shape = tuple(jax.ShapeDtypeStruct((B, D_out), out_dtype) for _ in range(3))
        out_specs = tuple(pl.BlockSpec((tb, D_out), lambda i: (i, 0)) for _ in range(3))

    # Raise the scoped VMEM limit to cover the working set (v5e default is 16 MiB).
    weight_bytes = (D_in * 2 * D_out + 2 * D_out) * in_itemsize
    per_row = ((2 * D_in + 2 * D_out) * in_itemsize
               + (2 * 3 * D_out) * out_itemsize
               + 2 * D_out * 4)
    need = weight_bytes + tb * per_row
    vmem_limit = int(min(vmem_cap, max(need + (8 << 20), 32 << 20)))

    kernel = partial(_normal_layer_kernel, d_out=D_out, fused_out=fused_out)

    result = pl.pallas_call(
        kernel,
        out_shape=out_shape,
        grid=grid,
        in_specs=in_specs,
        out_specs=out_specs,
        compiler_params=pltpu.CompilerParams(
            dimension_semantics=("parallel",),      # batch axis; independent per tile
            vmem_limit_bytes=vmem_limit,
        ),
        cost_estimate=pl.CostEstimate(
            flops=2 * B * D_in * (2 * D_out),
            transcendentals=B * D_out,
            bytes_accessed=(B * D_in + D_in * 2 * D_out + 2 * D_out + B * D_out) * in_itemsize
                           + 3 * B * D_out * out_itemsize,
        ),
    )(x, w_cat, b_cat2, eps)

    if fused_out:
        slab = result
        mu = slab[:, :D_out]
        scale = slab[:, D_out:2 * D_out]
        samples = slab[:, 2 * D_out:]
    else:
        mu, scale, samples = result
    return mu, scale, samples


class NormalDistribution:
    """Minimal stand-in for torch.distributions.Normal (holds loc/scale arrays)."""

    def __init__(self, loc, scale):
        self.loc = loc
        self.scale = scale


class ParameterizedOutput:
    def __init__(self, /, **kwargs):
        self.__dict__.update(kwargs)

    def __repr__(self):
        items = [f"{k}={repr(v)}" for k, v in self.__dict__.items()]
        return "{}({})".format(type(self).__name__, ",\n ".join(items))


class NormalLayerPallas:
    """JAX/Pallas equivalent of NormalLayer (forward pass only)."""

    def __init__(self, key, latent_dim, gaussian_dim=None, dtype=jnp.float32):
        if gaussian_dim is None:
            gaussian_dim = latent_dim
        self.latent_dim = latent_dim
        self.gaussian_dim = gaussian_dim
        k1, k2, k3, k4 = jax.random.split(key, 4)
        bound = 1.0 / math.sqrt(latent_dim)
        # Stored pre-transposed as (latent_dim, gaussian_dim), like nn.Linear init.
        self.w_mu = jax.random.uniform(k1, (latent_dim, gaussian_dim), dtype, -bound, bound)
        self.b_mu = jax.random.uniform(k2, (gaussian_dim,), dtype, -bound, bound)
        self.w_lv = jax.random.uniform(k3, (latent_dim, gaussian_dim), dtype, -bound, bound)
        self.b_lv = jax.random.uniform(k4, (gaussian_dim,), dtype, -bound, bound)
        # Concatenated once at init so the kernel streams x through the MXU a single
        # time and fills the 256-wide MXU N dimension on v6e/v7x.
        self.w_cat = jnp.concatenate([self.w_mu, self.w_lv], axis=1)
        self.b_cat = jnp.concatenate([self.b_mu, self.b_lv], axis=0)

    def __call__(self, encoding, sample_key):
        eps = jax.random.normal(sample_key, (encoding.shape[0], self.gaussian_dim),
                                dtype=encoding.dtype)
        mu, scale, samples = normal_layer_forward(encoding, self.w_cat, self.b_cat, eps)
        # TODO(synk): torch.distributions.Normal / kl_divergence have no Pallas
        # equivalent; the distribution is returned as its (loc, scale) arrays.
        return ParameterizedOutput(
            distribution=NormalDistribution(loc=mu, scale=scale),
            samples=samples,
        ), eps


if __name__ == "__main__":
    key = jax.random.PRNGKey(0)

    def reference(x, layer, eps):
        xf = x.astype(jnp.float32)
        mu = xf @ layer.w_mu.astype(jnp.float32) + layer.b_mu.astype(jnp.float32)
        lv = xf @ layer.w_lv.astype(jnp.float32) + layer.b_lv.astype(jnp.float32)
        scale = jnp.exp(0.5 * lv)
        return mu, scale, mu + scale * eps.astype(jnp.float32)

    def check(out, refs, tol):
        mu_r, sc_r, sp_r = refs
        assert out.samples.shape == sp_r.shape
        assert bool(jnp.allclose(out.distribution.loc.astype(jnp.float32), mu_r, atol=tol, rtol=tol))
        assert bool(jnp.allclose(out.distribution.scale.astype(jnp.float32), sc_r, atol=tol, rtol=tol))
        assert bool(jnp.allclose(out.samples.astype(jnp.float32), sp_r, atol=tol, rtol=tol))

    # 1) f32, gaussian_dim % 128 == 0, ragged batch (B=10 not a multiple of the tile).
    k_init, k_x, k_eps, key = jax.random.split(key, 4)
    layer = NormalLayerPallas(k_init, 128, 128)
    x = jax.random.normal(k_x, (10, 128), dtype=jnp.float32)
    out, eps = layer(x, k_eps)
    jax.block_until_ready(out.samples)
    check(out, reference(x, layer, eps), 2e-2)

    # 2) f32, gaussian_dim=64 -> exercises the fused lane-dense output-slab path.
    k_init, k_x, k_eps, key = jax.random.split(key, 4)
    layer = NormalLayerPallas(k_init, 128, 64)
    x = jax.random.normal(k_x, (8, 128), dtype=jnp.float32)
    out, eps = layer(x, k_eps)
    jax.block_until_ready(out.samples)
    check(out, reference(x, layer, eps), 2e-2)

    # 3) bf16 I/O (halves HBM traffic); accumulate / exp math stays f32 in-kernel.
    k_init, k_x, k_eps, key = jax.random.split(key, 4)
    layer = NormalLayerPallas(k_init, 128, 128, dtype=jnp.bfloat16)
    x = jax.random.normal(k_x, (8, 128), dtype=jnp.bfloat16)
    out, eps = layer(x, k_eps)
    jax.block_until_ready(out.samples)
    check(out, reference(x, layer, eps), 5e-2)

    print("KERNEL_OK")
</pallas_src>

<mosaic_0001>
module attributes {stable_mosaic.version = 11 : i64} {
  func.func @_normal_layer_kernel(%arg0: i32, %arg1: memref<16x128xf32, #tpu.memory_space<vmem>>, %arg2: memref<128x256xf32, #tpu.memory_space<vmem>>, %arg3: memref<1x256xf32, #tpu.memory_space<vmem>>, %arg4: memref<16x128xf32, #tpu.memory_space<vmem>>, %arg5: memref<16x128xf32, #tpu.memory_space<vmem>>, %arg6: memref<16x128xf32, #tpu.memory_space<vmem>>, %arg7: memref<16x128xf32, #tpu.memory_space<vmem>>) attributes {dimension_semantics = [#tpu.dimension_semantics<parallel>], iteration_bounds = array<i64: 1>, scalar_prefetch = 0 : i64, scratch_operands = 0 : i64, tpu.core_type = #tpu.core_type<tc>, window_params = [{transform_indices = @transform_0, window_bounds = array<i64: 16, 128>}, {pipeline_mode = #tpu.pipeline_mode<synchronous>, transform_indices = @transform_1, window_bounds = array<i64: 128, 256>}, {pipeline_mode = #tpu.pipeline_mode<synchronous>, transform_indices = @transform_2, window_bounds = array<i64: 1, 256>}, {transform_indices = @transform_3, window_bounds = array<i64: 16, 128>}, {transform_indices = @transform_4, window_bounds = array<i64: 16, 128>}, {transform_indices = @transform_5, window_bounds = array<i64: 16, 128>}, {transform_indices = @transform_6, window_bounds = array<i64: 16, 128>}]} {
    %c0 = arith.constant 0 : index
    %c0_0 = arith.constant 0 : index
    %0 = vector.load %arg1[%c0, %c0_0] : memref<16x128xf32, #tpu.memory_space<vmem>>, vector<16x128xf32>
    %c0_1 = arith.constant 0 : index
    %c0_2 = arith.constant 0 : index
    %1 = vector.load %arg2[%c0_1, %c0_2] : memref<128x256xf32, #tpu.memory_space<vmem>>, vector<128x256xf32>
    %cst = arith.constant dense<0.000000e+00> : vector<16x256xf32>
    %2 = tpu.matmul %0, %1, %cst {dimension_numbers = #tpu.dot_dimension_numbers<[1], [0], [0], [1], [0, 0, 1, 1], [], []>} : vector<16x128xf32>, vector<128x256xf32>, vector<16x256xf32> -> vector<16x256xf32>
    %c0_3 = arith.constant 0 : index
    %c0_4 = arith.constant 0 : index
    %3 = vector.load %arg3[%c0_3, %c0_4] : memref<1x256xf32, #tpu.memory_space<vmem>>, vector<1x256xf32>
    %4 = vector.broadcast %3 : vector<1x256xf32> to vector<16x256xf32>
    %5 = arith.addf %2, %4 : vector<16x256xf32>
    %6 = vector.extract_strided_slice %5 {offsets = [0, 0], sizes = [16, 128], strides = [1, 1]} : vector<16x256xf32> to vector<16x128xf32>
    %7 = vector.extract_strided_slice %5 {offsets = [0, 128], sizes = [16, 128], strides = [1, 1]} : vector<16x256xf32> to vector<16x128xf32>
    %cst_5 = arith.constant 5.000000e-01 : f32
    %8 = vector.broadcast %cst_5 : f32 to vector<16x128xf32>
    %9 = arith.mulf %8, %7 : vector<16x128xf32>
    %10 = math.exp %9 : vector<16x128xf32>
    %c0_6 = arith.constant 0 : index
    %c0_7 = arith.constant 0 : index
    %11 = vector.load %arg4[%c0_6, %c0_7] : memref<16x128xf32, #tpu.memory_space<vmem>>, vector<16x128xf32>
    %12 = arith.mulf %10, %11 : vector<16x128xf32>
    %13 = arith.addf %6, %12 : vector<16x128xf32>
    %c0_8 = arith.constant 0 : index
    %c0_9 = arith.constant 0 : index
    %14 = vector.load %arg5[%c0_8, %c0_9] : memref<16x128xf32, #tpu.memory_space<vmem>>, vector<16x128xf32>
    tpu.vector_store %arg5[%c0_8, %c0_9], %6 {strides = array<i32>} : memref<16x128xf32, #tpu.memory_space<vmem>>, vector<16x128xf32>,
    %c0_10 = arith.constant 0 : index
    %c0_11 = arith.constant 0 : index
    %15 = vector.load %arg6[%c0_10, %c0_11] : memref<16x128xf32, #tpu.memory_space<vmem>>, vector<16x128xf32>
    tpu.vector_store %arg6[%c0_10, %c0_11], %10 {strides = array<i32>} : memref<16x128xf32, #tpu.memory_space<vmem>>, vector<16x128xf32>,
    %c0_12 = arith.constant 0 : index
    %c0_13 = arith.constant 0 : index
    %16 = vector.load %arg7[%c0_12, %c0_13] : memref<16x128xf32, #tpu.memory_space<vmem>>, vector<16x128xf32>
    tpu.vector_store %arg7[%c0_12, %c0_13], %13 {strides = array<i32>} : memref<16x128xf32, #tpu.memory_space<vmem>>, vector<16x128xf32>,
    return
  }
  func.func @transform_0(%arg0: i32) -> (i32, i32) {
    %c0_i32 = arith.constant 0 : i32
    %c0_i32_0 = arith.constant 0 : i32
    return %arg0, %c0_i32 : i32, i32
  }
  func.func @transform_1(%arg0: i32) -> (i32, i32) {
    %c0_i32 = arith.constant 0 : i32
    %c0_i32_0 = arith.constant 0 : i32
    %c0_i32_1 = arith.constant 0 : i32
    return %c0_i32, %c0_i32_0 : i32, i32
  }
  func.func @transform_2(%arg0: i32) -> (i32, i32) {
    %c0_i32 = arith.constant 0 : i32
    %c0_i32_0 = arith.constant 0 : i32
    %c0_i32_1 = arith.constant 0 : i32
    return %c0_i32, %c0_i32_0 : i32, i32
  }
  func.func @transform_3(%arg0: i32) -> (i32, i32) {
    %c0_i32 = arith.constant 0 : i32
    %c0_i32_0 = arith.constant 0 : i32
    return %arg0, %c0_i32 : i32, i32
  }
  func.func @transform_4(%arg0: i32) -> (i32, i32) {
    %c0_i32 = arith.constant 0 : i32
    %c0_i32_0 = arith.constant 0 : i32
    return %arg0, %c0_i32 : i32, i32
  }
  func.func @transform_5(%arg0: i32) -> (i32, i32) {
    %c0_i32 = arith.constant 0 : i32
    %c0_i32_0 = arith.constant 0 : i32
    return %arg0, %c0_i32 : i32, i32
  }
  func.func @transform_6(%arg0: i32) -> (i32, i32) {
    %c0_i32 = arith.constant 0 : i32
    %c0_i32_0 = arith.constant 0 : i32
    return %arg0, %c0_i32 : i32, i32
  }
}

</mosaic_0001>

<bundles_post_ra>
// kernel: tpu_custom_call.1
= control target key start
LH: loop header
LB: loop body
LE: loop exit
PB: predicated region body
PF: predicated region fallthrough
CT: control target
= control target key end

     0   :  { %12 = vsyncpa [#allocation3], 0  ;;  %s510_s0 = inlined_call_operand.hbm [shape: f32[10,128], index: 0, kind: input, shape index: {}]   ;;  %s511_s1 = inlined_call_operand.hbm [shape: f32[128,256], index: 1, kind: input, shape index: {}]   ;;  %s512_s2 = inlined_call_operand.vmem [shape: f32[1,256], index: 2, kind: input, shape index: {}]   ;;  %s513_s3 = inlined_call_operand.hbm [shape: f32[10,128], index: 3, kind: input, shape index: {}]   ;;  %s514_s4 = inlined_call_operand.hbm [shape: f32[10,128], index: 4, kind: output, shape index: {0}]   ;;  %s515_s5 = inlined_call_operand.hbm [shape: f32[10,128], index: 5, kind: output, shape index: {1}]   ;;  %s516_s6 = inlined_call_operand.hbm [shape: f32[10,128], index: 6, kind: output, shape index: {2}]  }
   0x1   :  { %13 = vsyncpa [#allocation6], 0 }
   0x2   :  { %14 = vsyncpa [#allocation4], 0 }
   0x3   :  { %15 = vsyncpa [#allocation10], 0  ;;  %s428_s21 = smov [#allocation5]  }
   0x4   :  { %s33_s22 = sshll.u32 %s428_s21, 4  ;;  %s34_s22 = int_to_ptr.vmem [resolvable:$true] %s33_s22 }
   0x5   :  { %s308_s23 = scalar_lea.vmem %s34_s22, 4096  ;;  %p313_p1 = scmp.lt.s32.totalorder %s34_s22, %s34_s22 }
   0x6   :  { %p309_p0 = scmp.ne.s32.totalorder %s34_s22, %s308_s23  ;;  %p314_p2 = scmp.lt.s32.totalorder %s308_s23, %s308_s23 }
   0x8   :  { %p315_p3 = por %p314_p2, %p313_p1 }
   0xa   :  { %p316_p4 = pnand %p315_p3, %p309_p0 }
   0xc   :  { %319 = shalt.err (!%p316_p4)
}
   0xd   :  { %s429_s24 = smov 256   ;;  %s430_s25 = smov 16  }
   0xe   :  { %39 = dma.hbm_to_vmem [thread:$0]  %s511_s1, 4096, %s34_s22, [#allocation6], %s429_s24, %s429_s24, %s430_s25  }
   0xf   :  { %s431_s28 = smov [#allocation2]  }
  0x10   :  { %s21_s29 = sshll.u32 %s431_s28, 4  ;;  %s22_s29 = int_to_ptr.vmem [resolvable:$true] %s21_s29 }
  0x11   :  { %s328_s30 = scalar_lea.vmem %s22_s29, 256  ;;  %p333_p6 = scmp.lt.s32.totalorder %s22_s29, %s22_s29 }
  0x12   :  { %p329_p5 = scmp.ne.s32.totalorder %s22_s29, %s328_s30  ;;  %p334_p7 = scmp.lt.s32.totalorder %s328_s30, %s328_s30 }
  0x14   :  { %p335_p8 = por %p334_p7, %p333_p6 }
  0x16   :  { %p336_p9 = pnand %p335_p8, %p329_p5 }
  0x18   :  { %339 = shalt.err (!%p336_p9)
}
  0x19   :  { %s432_s7 = smov 128   ;;  %s433_s8 = smov 8  }
  0x1a   :  { %27 = dma.hbm_to_vmem [thread:$0]  %s510_s0, 256, %s22_s29, [#allocation3], %s432_s7, %s432_s7, %s433_s8  }
  0x1b   :  { %s434_s1 = smov [#allocation7]  }
  0x1c   :  { %s47_s11 = sshll.u32 %s434_s1, 4  ;;  %s48_s11 = int_to_ptr.vmem [resolvable:$true] %s47_s11 }
  0x1d   :  { %s348_s12 = scalar_lea.vmem %s48_s11, 256  ;;  %p353_p11 = scmp.lt.s32.totalorder %s48_s11, %s48_s11 }
  0x1e   :  { %p349_p10 = scmp.ne.s32.totalorder %s48_s11, %s348_s12  ;;  %p354_p12 = scmp.lt.s32.totalorder %s348_s12, %s348_s12 }
  0x20   :  { %p355_p13 = por %p354_p12, %p353_p11 }
  0x22   :  { %p356_p0 = pnand %p355_p13, %p349_p10 }
  0x24   :  { %359 = shalt.err (!%p356_p0)
}
  0x25   :  { %53 = dma.hbm_to_vmem [thread:$0]  %s513_s3, 256, %s48_s11, [#allocation6], %s432_s7, %s432_s7, %s433_s8  }
  0x26   :  { %420 = dma.done.wait [#allocation3], 256  }
  0x27   :  { %421 = vsyncadd [#allocation3], 4294967040 }
  0x28   :  { %422 = dma.done.wait [#allocation6], 4352  }
  0x29   :  { %423 = vsyncadd [#allocation6], 4294962944  ;;  %v435_v0 = vmov 0.0   ;;  %v96_v1 = vld [vmem:[#allocation5 + $0xf8] sm:$0xff]  ;;  %v95_v2 = vld [vmem:[#allocation5 + $0xf0] sm:$0xff]  ;;  %v99_v35 = vlaneseq  ;;  %s436_s15 = smov [#allocation8]  }
  0x2a   :  { %173 = vmatprep.mubr.f32.mxu0 %v435_v0  ;;  %179 = vmatprep.mubr.f32.mxu1 %v435_v0  ;;  %v94_v3 = vld [vmem:[#allocation5 + $0xe8] sm:$0xff]  ;;  %v93_v4 = vld [vmem:[#allocation5 + $0xe0] sm:$0xff]  ;;  %v92_v5 = vld [vmem:[#allocation5 + $0xd8] sm:$0xff]  ;;  %s209_s16 = sshll.u32 %s436_s15, 4  ;;  %s210_s16 = int_to_ptr.vmem [resolvable:$true] %s209_s16 }
  0x2b   :  { %109 = vmatprep.subr.mxu0 %v96_v1  ;;  %253 = vmatprep.subr.mxu1 %v96_v1  ;;  %v91_v6 = vld [vmem:[#allocation5 + $0xd0] sm:$0xff]  ;;  %v90_v7 = vld [vmem:[#allocation5 + $0xc8] sm:$0xff]  ;;  %v89_v8 = vld [vmem:[#allocation5 + $0xc0] sm:$0xff]  ;;  %v100_v36 = vshrl.u32 %v99_v35, 7  ;;  %s360_s17 = scalar_lea.vmem %s210_s16, 256  ;;  %p365_p2 = scmp.lt.s32.totalorder %s210_s16, %s210_s16 }
  0x2c   :  { %110 = vmatpush1.msra.mxu0 %v95_v2  ;;  %269 = vmatpush1.msra.mxu1 %v95_v2  ;;  %v88_v9 = vld [vmem:[#allocation5 + $0xb8] sm:$0xff]  ;;  %v87_v10 = vld [vmem:[#allocation5 + $0xb0] sm:$0xff]  ;;  %v86_v11 = vld [vmem:[#allocation5 + $0xa8] sm:$0xff]  ;;  %p361_p1 = scmp.ne.s32.totalorder %s210_s16, %s360_s17  ;;  %p366_p3 = scmp.lt.s32.totalorder %s360_s17, %s360_s17 }
  0x2d   :  { %111 = vmatprep.subr.mxu0 %v94_v3  ;;  %254 = vmatprep.subr.mxu1 %v94_v3  ;;  %v85_v12 = vld [vmem:[#allocation5 + $0xa0] sm:$0xff]  ;;  %v84_v13 = vld [vmem:[#allocation5 + $0x98] sm:$0xff]  ;;  %v83_v14 = vld [vmem:[#allocation5 + $0x90] sm:$0xff]  ;;  %v101_v37 = vsub.s32 0, %v100_v36  ;;  %v105_v39 = vsub.s32 1, %v100_v36 }
  0x2e   :  { %112 = vmatpush1.msra.mxu0 %v93_v4  ;;  %270 = vmatpush1.msra.mxu1 %v93_v4  ;;  %v82_v15 = vld [vmem:[#allocation5 + $0x88] sm:$0xff]  ;;  %v81_v16 = vld [vmem:[#allocation5 + $0x80] sm:$0xff]  ;;  %v80_v17 = vld [vmem:[#allocation5 + $0x78] sm:$0xff]  ;;  %p367_p4 = por %p366_p3, %p365_p2 }
  0x2f   :  { %113 = vmatprep.subr.mxu0 %v92_v5  ;;  %255 = vmatprep.subr.mxu1 %v92_v5  ;;  %v79_v18 = vld [vmem:[#allocation5 + $0x70] sm:$0xff]  ;;  %v78_v19 = vld [vmem:[#allocation5 + $0x68] sm:$0xff]  ;;  %v77_v20 = vld [vmem:[#allocation5 + $0x60] sm:$0xff] }
  0x30   :  { %114 = vmatpush1.msra.mxu0 %v91_v6  ;;  %271 = vmatpush1.msra.mxu1 %v91_v6  ;;  %v76_v21 = vld [vmem:[#allocation5 + $0x58] sm:$0xff]  ;;  %v75_v22 = vld [vmem:[#allocation5 + $0x50] sm:$0xff]  ;;  %v74_v23 = vld [vmem:[#allocation5 + $0x48] sm:$0xff]  ;;  %p368_p5 = pnand %p367_p4, %p361_p1 }
  0x31   :  { %115 = vmatprep.subr.mxu0 %v90_v7  ;;  %256 = vmatprep.subr.mxu1 %v90_v7  ;;  %v73_v24 = vld [vmem:[#allocation5 + $0x40] sm:$0xff]  ;;  %v72_v25 = vld [vmem:[#allocation5 + $0x38] sm:$0xff]  ;;  %v71_v26 = vld [vmem:[#allocation5 + $0x30] sm:$0xff] }
  0x32   :  { %116 = vmatpush1.msra.mxu0 %v89_v8  ;;  %272 = vmatpush1.msra.mxu1 %v89_v8  ;;  %v70_v27 = vld [vmem:[#allocation5 + $0x28] sm:$0xff]  ;;  %v69_v28 = vld [vmem:[#allocation5 + $0x20] sm:$0xff]  ;;  %v68_v29 = vld [vmem:[#allocation5 + $0x18] sm:$0xff] }
  0x33   :  { %117 = vmatprep.subr.mxu0 %v88_v9  ;;  %257 = vmatprep.subr.mxu1 %v88_v9  ;;  %v67_v30 = vld [vmem:[#allocation5 + $0x10] sm:$0xff]  ;;  %v66_v31 = vld [vmem:[#allocation5 + $0x8] sm:$0xff]  ;;  %v65_v32 = vld [vmem:[#allocation5] sm:$0xff] }
  0x34   :  { %118 = vmatpush1.msra.mxu0 %v87_v10  ;;  %273 = vmatpush1.msra.mxu1 %v87_v10  ;;  %v63_v33 = vld [vmem:[#allocation2] sm:$0xff]  ;;  %v64_v34 = vld [vmem:[#allocation2 + $0x8] sm:$0xff] }
  0x35   :  { %119 = vmatprep.subr.mxu0 %v86_v11  ;;  %258 = vmatprep.subr.mxu1 %v86_v11  ;;  %v97_v38 = vld [vmem:[%s512_s2] sm:$0x3] }
  0x36   :  { %120 = vmatpush1.msra.mxu0 %v85_v12  ;;  %274 = vmatpush1.msra.mxu1 %v85_v12  ;;  %v102_v40 = vrot.slane %v97_v38, %v101_v37  ;;  %v106_v41 = vrot.slane %v97_v38, %v105_v39 }
  0x37   :  { %121 = vmatprep.subr.mxu0 %v84_v13  ;;  %259 = vmatprep.subr.mxu1 %v84_v13 }
  0x38   :  { %122 = vmatpush1.msra.mxu0 %v83_v14  ;;  %275 = vmatpush1.msra.mxu1 %v83_v14 }
  0x39   :  { %123 = vmatprep.subr.mxu0 %v82_v15  ;;  %260 = vmatprep.subr.mxu1 %v82_v15 }
  0x3a   :  { %124 = vmatpush1.msra.mxu0 %v81_v16  ;;  %276 = vmatpush1.msra.mxu1 %v81_v16 }
  0x3b   :  { %125 = vmatprep.subr.mxu0 %v80_v17  ;;  %261 = vmatprep.subr.mxu1 %v80_v17 }
  0x3c   :  { %126 = vmatpush1.msra.mxu0 %v79_v18  ;;  %277 = vmatpush1.msra.mxu1 %v79_v18 }
  0x3d   :  { %127 = vmatprep.subr.mxu0 %v78_v19  ;;  %262 = vmatprep.subr.mxu1 %v78_v19 }
  0x3e   :  { %128 = vmatpush1.msra.mxu0 %v77_v20  ;;  %278 = vmatpush1.msra.mxu1 %v77_v20 }
  0x3f   :  { %129 = vmatprep.subr.mxu0 %v76_v21  ;;  %263 = vmatprep.subr.mxu1 %v76_v21 }
  0x40   :  { %130 = vmatpush1.msra.mxu0 %v75_v22  ;;  %279 = vmatpush1.msra.mxu1 %v75_v22 }
  0x41   :  { %131 = vmatprep.subr.mxu0 %v74_v23  ;;  %264 = vmatprep.subr.mxu1 %v74_v23 }
  0x42   :  { %132 = vmatpush1.msra.mxu0 %v73_v24  ;;  %280 = vmatpush1.msra.mxu1 %v73_v24 }
  0x43   :  { %133 = vmatprep.subr.mxu0 %v72_v25  ;;  %265 = vmatprep.subr.mxu1 %v72_v25 }
  0x44   :  { %134 = vmatpush1.msra.mxu0 %v71_v26  ;;  %281 = vmatpush1.msra.mxu1 %v71_v26 }
  0x45   :  { %135 = vmatprep.subr.mxu0 %v70_v27  ;;  %266 = vmatprep.subr.mxu1 %v70_v27 }
  0x46   :  { %136 = vmatpush1.msra.mxu0 %v69_v28  ;;  %282 = vmatpush1.msra.mxu1 %v69_v28 }
  0x47   :  { %137 = vmatprep.subr.mxu0 %v68_v29  ;;  %267 = vmatprep.subr.mxu1 %v68_v29 }
  0x48   :  { %138 = vmatpush1.msra.mxu0 %v67_v30  ;;  %283 = vmatpush1.msra.mxu1 %v67_v30 }
  0x49   :  { %139 = vmatprep.subr.mxu0 %v66_v31  ;;  %268 = vmatprep.subr.mxu1 %v66_v31 }
  0x4a   :  { %140 = vmatpush1.msra.mxu0 %v65_v32  ;;  %284 = vmatpush1.msra.mxu1 %v65_v32 }
  0x4b   :  { %174 = vmatmul.mubr.f32.vlgmr.msra.gmra.mxu0 %v63_v33  ;;  %180 = vmatmul.mubr.f32.vlgmr.msra.gmra.mxu1 %v64_v34 }
 0x10b   :  { %v175_v42 = vpop.f32.mrf.mxu0  ;;  %v181_v43 = vpop.f32.mrf.mxu1 }
 0x10c   :  { %v176_v44 = vadd.f32 %v175_v42, %v102_v40  ;;  %v182_v45 = vadd.f32 %v181_v43, %v102_v40 }
 0x10d   :  { %v177_v46 = vpop.f32.mrf.mxu0  ;;  %v183_v47 = vpop.f32.mrf.mxu1 }
 0x10e   :  { %198 = vst [vmem:[#allocation8] sm:$0xff] %v176_v44  ;;  %199 = vst [vmem:[#allocation8 + $0x8] sm:$0xff] %v182_v45  ;;  %v178_v48 = vadd.f32 %v177_v46, %v106_v41  ;;  %v184_v49 = vadd.f32 %v183_v47, %v106_v41 }
 0x10f   :  { %371 = shalt.err (!%p368_p5)
}
 0x110   :  { %215 = dma.vmem_to_hbm [thread:$0]  %s210_s16, 256, %s514_s4, [#allocation4], %s432_s7, %s432_s7, %s433_s8   ;;  %v186_v50 = vmul.f32 0.5, %v178_v48  ;;  %v187_v51 = vmul.f32 0.5, %v184_v49  ;;  %v192_v54 = vld [vmem:[#allocation7] sm:$0xff]  ;;  %v193_v55 = vld [vmem:[#allocation7 + $0x8] sm:$0xff] }
 0x111   :  { %s437_s19 = smov [#allocation9]   ;;  %s438_s21 = smov [#allocation11]  }
 0x112   :  { %v188_v52 = vmul.f32 1.442695, %v186_v50  ;;  %v190_v53 = vmul.f32 1.442695, %v187_v51  ;;  %s221_s20 = sshll.u32 %s437_s19, 4  ;;  %s233_s22 = sshll.u32 %s438_s21, 4  ;;  %s222_s20 = int_to_ptr.vmem [resolvable:$true] %s221_s20  ;;  %s234_s22 = int_to_ptr.vmem [resolvable:$true] %s233_s22 }
 0x113   :  { %s380_s4 = scalar_lea.vmem %s222_s20, 256  ;;  %p385_p7 = scmp.lt.s32.totalorder %s222_s20, %s222_s20 }
 0x114   :  { %296 = vpow2.f32 %v188_v52  ;;  %p381_p6 = scmp.ne.s32.totalorder %s222_s20, %s380_s4  ;;  %p386_p8 = scmp.lt.s32.totalorder %s380_s4, %s380_s4 }
 0x115   :  { %298 = vpow2.f32 %v190_v53 }
 0x116   :  { %p387_p9 = por %p386_p8, %p385_p7 }
 0x118   :  { %p388_p10 = pnand %p387_p9, %p381_p6 }
 0x121   :  { %v297_v56 = vpop.eup %296 }
 0x122   :  { %v299_v57 = vpop.eup %298  ;;  %200 = vst [vmem:[#allocation9] sm:$0xff] %v297_v56  ;;  %v194_v58 = vmul.f32 %v297_v56, %v192_v54 }
 0x123   :  { %201 = vst [vmem:[#allocation9 + $0x8] sm:$0xff] %v299_v57  ;;  %v195_v59 = vmul.f32 %v299_v57, %v193_v55 }
 0x124   :  { %391 = shalt.err (!%p388_p10)
}
 0x125   :  { %227 = dma.vmem_to_hbm [thread:$0]  %s222_s20, 256, %s515_s5, [#allocation10], %s432_s7, %s432_s7, %s433_s8   ;;  %v196_v60 = vadd.f32 %v194_v58, %v176_v44  ;;  %v197_v61 = vadd.f32 %v195_v59, %v182_v45 }
 0x126   :  { %s400_s25 = scalar_lea.vmem %s234_s22, 256  ;;  %p405_p12 = scmp.lt.s32.totalorder %s234_s22, %s234_s22 }
 0x127   :  { %202 = vst [vmem:[#allocation11] sm:$0xff] %v196_v60  ;;  %203 = vst [vmem:[#allocation11 + $0x8] sm:$0xff] %v197_v61  ;;  %p401_p11 = scmp.ne.s32.totalorder %s234_s22, %s400_s25  ;;  %p406_p13 = scmp.lt.s32.totalorder %s400_s25, %s400_s25 }
 0x129   :  { %p407_p0 = por %p406_p13, %p405_p12 }
 0x12b   :  { %p408_p1 = pnand %p407_p0, %p401_p11 }
 0x12d   :  { %411 = shalt.err (!%p408_p1)
}
 0x12e   :  { %239 = dma.vmem_to_hbm [thread:$0]  %s234_s22, 256, %s516_s6, [#allocation10], %s432_s7, %s432_s7, %s433_s8  }
 0x12f   :  { %424 = dma.done.wait [#allocation4], 256  }
 0x130   :  { %425 = vsyncadd [#allocation4], 4294967040 }
 0x131   :  { %426 = dma.done.wait [#allocation10], 512  }
 0x132   :  { %427 = vsyncadd [#allocation10], 4294966784 }
 0x133   :  { %249 = vsyncpa [#allocation3], 1 }
 0x134   :  { %250 = vsyncpa [#allocation6], 1 }
 0x135   :  { %251 = vsyncpa [#allocation4], 1 }
 0x136   :  { %252 = vsyncpa [#allocation10], 1 }

</bundles_post_ra>
